<compile_context>
chip_gen: v5e
topology: v5e:2x2
jax: 0.10.0
libtpu: 0.0.40
codegen_flags: <defaults>
</compile_context>

<pallas_src>
import jax
import jax.numpy as jnp
from jax.experimental import pallas as pl
from jax.experimental.pallas import tpu as pltpu


def mlp_kernel(x_ref, w1_ref, b1_ref, w2_ref, b2_ref, w3_ref, b3_ref, o_ref):
    # In-kernel bf16 cast of the streamed x tile (MXU operand); accum stays f32.
    x = x_ref[...].astype(jnp.bfloat16)

    # layer1: Linear + ReLU
    h1 = jnp.dot(x, w1_ref[...], preferred_element_type=jnp.float32)
    h1 = jnp.maximum(h1 + b1_ref[...], 0.0)

    # layer2: Linear + ReLU
    h2 = jnp.dot(h1.astype(jnp.bfloat16), w2_ref[...],
                 preferred_element_type=jnp.float32)
    h2 = jnp.maximum(h2 + b2_ref[...], 0.0)

    # layer3: Linear + Sigmoid (exp -> EUP, approx reciprocal -> EUP).
    # Padded/masked rows of the partial last block may produce inf/NaN here;
    # rows are independent and those lanes are masked on store, so harmless.
    h3 = jnp.dot(h2.astype(jnp.bfloat16), w3_ref[...],
                 preferred_element_type=jnp.float32)
    h3 = h3 + b3_ref[...]
    sig = pl.reciprocal(1.0 + jnp.exp(-h3), approx=True)
    o_ref[...] = sig.astype(o_ref.dtype)


def prepare_params(w1, b1, w2, b2, w3, b3):
    """One-time prep: bf16 weights (MXU operands), f32 (1, dim) biases."""
    as_bias = lambda b: jnp.asarray(b, jnp.float32).reshape(1, -1)
    return (w1.astype(jnp.bfloat16), as_bias(b1),
            w2.astype(jnp.bfloat16), as_bias(b2),
            w3.astype(jnp.bfloat16), as_bias(b3))


def _choose_tm(batch, in_dim, out_dim, weight_bytes, bias_bytes, tm_max=1024):
    # At least 2 grid steps when the batch allows it (v7x megacore sharding),
    # tiles sublane-aligned (multiple of 8 rows), capped at tm_max.
    min_steps = 2 if batch > 8 else 1
    steps = max(min_steps, pl.cdiv(batch, tm_max))
    tm = max(8, min(tm_max, pl.cdiv(pl.cdiv(batch, steps), 8) * 8))

    # Clamp against an explicit VMEM budget (conservative across v5e/v6e/v7x):
    # 2x double-buffered f32 x tile + 2x double-buffered bf16 out tile
    # + resident bf16 weights + f32 biases.
    vmem_budget = 16 * 1024 * 1024
    per_row = 2 * in_dim * 4 + 2 * out_dim * 2
    resident_bytes = weight_bytes + bias_bytes
    if resident_bytes < vmem_budget:
        max_rows = (vmem_budget - resident_bytes) // per_row
        tm = min(tm, max(8, (max_rows // 8) * 8))
    # TODO(synk): if feature dims grow to ~2-4k so the weights themselves blow
    # the VMEM budget, switch layer weights to a K/N-tiled inner loop with an
    # f32 accumulator instead of full residency.
    return tm


def mlp_forward(x, w1, b1, w2, b2, w3, b3, *, tm_max=1024):
    """x: (batch, in_dim) f32.  Weights bf16 [in, out], biases f32 (1, out)."""
    batch, in_dim = x.shape
    h1_dim = w1.shape[1]
    h2_dim = w2.shape[1]
    out_dim = w3.shape[1]

    weight_bytes = 2 * (w1.size + w2.size + w3.size)      # bf16
    bias_bytes = 4 * (b1.size + b2.size + b3.size)        # f32
    tm = _choose_tm(batch, in_dim, out_dim, weight_bytes, bias_bytes, tm_max)
    grid = (pl.cdiv(batch, tm),)                          # partial block masked

    flops = 2 * batch * (in_dim * h1_dim + h1_dim * h2_dim + h2_dim * out_dim)
    bytes_accessed = (batch * in_dim * 4                  # f32 x read
                      + batch * out_dim * 2               # bf16 out write
                      + weight_bytes + bias_bytes)

    def resident(shape):
        # Same block every grid step -> stays resident in VMEM across tiles.
        return pl.BlockSpec(shape, lambda i: (0, 0))

    out = pl.pallas_call(
        mlp_kernel,
        out_shape=jax.ShapeDtypeStruct((batch, out_dim), jnp.bfloat16),
        grid=grid,
        in_specs=[
            pl.BlockSpec((tm, in_dim), lambda i: (i, 0)),   # x: pipelined tiles
            resident((in_dim, h1_dim)),
            resident((1, h1_dim)),
            resident((h1_dim, h2_dim)),
            resident((1, h2_dim)),
            resident((h2_dim, out_dim)),
            resident((1, out_dim)),
        ],
        out_specs=pl.BlockSpec((tm, out_dim), lambda i: (i, 0)),
        compiler_params=pltpu.CompilerParams(
            dimension_semantics=("parallel",),              # shard batch tiles
            vmem_limit_bytes=32 * 1024 * 1024),             # safe on v5e/v6e/v7x
        cost_estimate=pl.CostEstimate(
            flops=flops,
            transcendentals=batch * out_dim,
            bytes_accessed=bytes_accessed),
    )(x, w1, b1, w2, b2, w3, b3)
    return out


def init_linear_params(key, in_features, out_features):
    """Deterministic init mimicking nn.Linear's U(-1/sqrt(in), 1/sqrt(in))."""
    kw, kb = jax.random.split(key)
    bound = 1.0 / jnp.sqrt(jnp.float32(in_features))
    # stored as (in_features, out_features) => kernel computes x @ W + b
    w = jax.random.uniform(kw, (in_features, out_features), jnp.float32,
                           minval=-bound, maxval=bound)
    b = jax.random.uniform(kb, (out_features,), jnp.float32,
                           minval=-bound, maxval=bound)
    return w, b


if __name__ == "__main__":
    # Small shapes consistent with Net(in_dim, n_hidden_1, n_hidden_2, out_dim)
    batch, in_dim, n_hidden_1, n_hidden_2, out_dim = 8, 32, 64, 32, 16

    key = jax.random.PRNGKey(0)
    kx, k1, k2, k3 = jax.random.split(key, 4)

    x = jax.random.normal(kx, (batch, in_dim), jnp.float32)
    w1f, b1f = init_linear_params(k1, in_dim, n_hidden_1)
    w2f, b2f = init_linear_params(k2, n_hidden_1, n_hidden_2)
    w3f, b3f = init_linear_params(k3, n_hidden_2, out_dim)

    # One-time bf16 weight prep (hoisted out of the per-call path).
    w1, b1, w2, b2, w3, b3 = prepare_params(w1f, b1f, w2f, b2f, w3f, b3f)

    out = mlp_forward(x, w1, b1, w2, b2, w3, b3)
    jax.block_until_ready(out)

    # Reference with the same bf16-rounded matmul operands (f32 math in XLA);
    # tolerance covers accumulation order, approx reciprocal and bf16 output.
    def bf(v):
        return v.astype(jnp.bfloat16).astype(jnp.float32)
    h1 = jnp.maximum(bf(x) @ bf(w1f) + b1, 0.0)
    h2 = jnp.maximum(bf(h1) @ bf(w2f) + b2, 0.0)
    ref = jax.nn.sigmoid(bf(h2) @ bf(w3f) + b3)

    assert out.shape == (batch, out_dim)
    assert out.dtype == jnp.bfloat16
    assert jnp.allclose(out.astype(jnp.float32), ref, atol=1e-2, rtol=1e-2)

    print("KERNEL_OK")
</pallas_src>

<mosaic_0001>
module attributes {stable_mosaic.version = 11 : i64} {
  func.func @mlp_kernel(%arg0: i32, %arg1: memref<8x32xf32, #tpu.memory_space<vmem>>, %arg2: memref<32x64xbf16, #tpu.memory_space<vmem>>, %arg3: memref<1x64xf32, #tpu.memory_space<vmem>>, %arg4: memref<64x32xbf16, #tpu.memory_space<vmem>>, %arg5: memref<1x32xf32, #tpu.memory_space<vmem>>, %arg6: memref<32x16xbf16, #tpu.memory_space<vmem>>, %arg7: memref<1x16xf32, #tpu.memory_space<vmem>>, %arg8: memref<8x16xbf16, #tpu.memory_space<vmem>>) attributes {dimension_semantics = [#tpu.dimension_semantics<parallel>], iteration_bounds = array<i64: 1>, scalar_prefetch = 0 : i64, scratch_operands = 0 : i64, tpu.core_type = #tpu.core_type<tc>, window_params = [{transform_indices = @transform_0, window_bounds = array<i64: 8, 32>}, {pipeline_mode = #tpu.pipeline_mode<synchronous>, transform_indices = @transform_1, window_bounds = array<i64: 32, 64>}, {pipeline_mode = #tpu.pipeline_mode<synchronous>, transform_indices = @transform_2, window_bounds = array<i64: 1, 64>}, {pipeline_mode = #tpu.pipeline_mode<synchronous>, transform_indices = @transform_3, window_bounds = array<i64: 64, 32>}, {pipeline_mode = #tpu.pipeline_mode<synchronous>, transform_indices = @transform_4, window_bounds = array<i64: 1, 32>}, {pipeline_mode = #tpu.pipeline_mode<synchronous>, transform_indices = @transform_5, window_bounds = array<i64: 32, 16>}, {pipeline_mode = #tpu.pipeline_mode<synchronous>, transform_indices = @transform_6, window_bounds = array<i64: 1, 16>}, {transform_indices = @transform_7, window_bounds = array<i64: 8, 16>}]} {
    %c0 = arith.constant 0 : index
    %c0_0 = arith.constant 0 : index
    %0 = vector.load %arg1[%c0, %c0_0] : memref<8x32xf32, #tpu.memory_space<vmem>>, vector<8x32xf32>
    %1 = arith.truncf %0 : vector<8x32xf32> to vector<8x32xbf16>
    %c0_1 = arith.constant 0 : index
    %c0_2 = arith.constant 0 : index
    %2 = vector.load %arg2[%c0_1, %c0_2] : memref<32x64xbf16, #tpu.memory_space<vmem>>, vector<32x64xbf16>
    %cst = arith.constant dense<0.000000e+00> : vector<8x64xf32>
    %3 = tpu.matmul %1, %2, %cst {dimension_numbers = #tpu.dot_dimension_numbers<[1], [0], [0], [1], [0, 0, 1, 1], [], []>} : vector<8x32xbf16>, vector<32x64xbf16>, vector<8x64xf32> -> vector<8x64xf32>
    %c0_3 = arith.constant 0 : index
    %c0_4 = arith.constant 0 : index
    %4 = vector.load %arg3[%c0_3, %c0_4] : memref<1x64xf32, #tpu.memory_space<vmem>>, vector<1x64xf32>
    %5 = vector.broadcast %4 : vector<1x64xf32> to vector<8x64xf32>
    %6 = arith.addf %3, %5 : vector<8x64xf32>
    %cst_5 = arith.constant 0.000000e+00 : f32
    %7 = vector.broadcast %cst_5 : f32 to vector<8x64xf32>
    %8 = arith.maximumf %6, %7 : vector<8x64xf32>
    %9 = arith.truncf %8 : vector<8x64xf32> to vector<8x64xbf16>
    %c0_6 = arith.constant 0 : index
    %c0_7 = arith.constant 0 : index
    %10 = vector.load %arg4[%c0_6, %c0_7] : memref<64x32xbf16, #tpu.memory_space<vmem>>, vector<64x32xbf16>
    %cst_8 = arith.constant dense<0.000000e+00> : vector<8x32xf32>
    %11 = tpu.matmul %9, %10, %cst_8 {dimension_numbers = #tpu.dot_dimension_numbers<[1], [0], [0], [1], [0, 0, 1, 1], [], []>} : vector<8x64xbf16>, vector<64x32xbf16>, vector<8x32xf32> -> vector<8x32xf32>
    %c0_9 = arith.constant 0 : index
    %c0_10 = arith.constant 0 : index
    %12 = vector.load %arg5[%c0_9, %c0_10] : memref<1x32xf32, #tpu.memory_space<vmem>>, vector<1x32xf32>
    %13 = vector.broadcast %12 : vector<1x32xf32> to vector<8x32xf32>
    %14 = arith.addf %11, %13 : vector<8x32xf32>
    %cst_11 = arith.constant 0.000000e+00 : f32
    %15 = vector.broadcast %cst_11 : f32 to vector<8x32xf32>
    %16 = arith.maximumf %14, %15 : vector<8x32xf32>
    %17 = arith.truncf %16 : vector<8x32xf32> to vector<8x32xbf16>
    %c0_12 = arith.constant 0 : index
    %c0_13 = arith.constant 0 : index
    %18 = vector.load %arg6[%c0_12, %c0_13] : memref<32x16xbf16, #tpu.memory_space<vmem>>, vector<32x16xbf16>
    %cst_14 = arith.constant dense<0.000000e+00> : vector<8x16xf32>
    %19 = tpu.matmul %17, %18, %cst_14 {dimension_numbers = #tpu.dot_dimension_numbers<[1], [0], [0], [1], [0, 0, 1, 1], [], []>} : vector<8x32xbf16>, vector<32x16xbf16>, vector<8x16xf32> -> vector<8x16xf32>
    %c0_15 = arith.constant 0 : index
    %c0_16 = arith.constant 0 : index
    %20 = vector.load %arg7[%c0_15, %c0_16] : memref<1x16xf32, #tpu.memory_space<vmem>>, vector<1x16xf32>
    %21 = vector.broadcast %20 : vector<1x16xf32> to vector<8x16xf32>
    %22 = arith.addf %19, %21 : vector<8x16xf32>
    %cst_17 = arith.constant 0.000000e+00 : f32
    %23 = vector.broadcast %cst_17 : f32 to vector<8x16xf32>
    %24 = arith.subf %23, %22 : vector<8x16xf32>
    %25 = math.exp %24 : vector<8x16xf32>
    %cst_18 = arith.constant 1.000000e+00 : f32
    %26 = vector.broadcast %cst_18 : f32 to vector<8x16xf32>
    %27 = arith.addf %26, %25 : vector<8x16xf32>
    %28 = tpu.reciprocal %27 {approx = true} : vector<8x16xf32> -> vector<8x16xf32>
    %29 = arith.truncf %28 : vector<8x16xf32> to vector<8x16xbf16>
    %c0_19 = arith.constant 0 : index
    %c0_20 = arith.constant 0 : index
    %30 = vector.load %arg8[%c0_19, %c0_20] : memref<8x16xbf16, #tpu.memory_space<vmem>>, vector<8x16xbf16>
    tpu.vector_store %arg8[%c0_19, %c0_20], %29 {strides = array<i32>} : memref<8x16xbf16, #tpu.memory_space<vmem>>, vector<8x16xbf16>,
    return
  }
  func.func @transform_0(%arg0: i32) -> (i32, i32) {
    %c0_i32 = arith.constant 0 : i32
    %c0_i32_0 = arith.constant 0 : i32
    return %arg0, %c0_i32 : i32, i32
  }
  func.func @transform_1(%arg0: i32) -> (i32, i32) {
    %c0_i32 = arith.constant 0 : i32
    %c0_i32_0 = arith.constant 0 : i32
    %c0_i32_1 = arith.constant 0 : i32
    return %c0_i32, %c0_i32_0 : i32, i32
  }
  func.func @transform_2(%arg0: i32) -> (i32, i32) {
    %c0_i32 = arith.constant 0 : i32
    %c0_i32_0 = arith.constant 0 : i32
    %c0_i32_1 = arith.constant 0 : i32
    return %c0_i32, %c0_i32_0 : i32, i32
  }
  func.func @transform_3(%arg0: i32) -> (i32, i32) {
    %c0_i32 = arith.constant 0 : i32
    %c0_i32_0 = arith.constant 0 : i32
    %c0_i32_1 = arith.constant 0 : i32
    return %c0_i32, %c0_i32_0 : i32, i32
  }
  func.func @transform_4(%arg0: i32) -> (i32, i32) {
    %c0_i32 = arith.constant 0 : i32
    %c0_i32_0 = arith.constant 0 : i32
    %c0_i32_1 = arith.constant 0 : i32
    return %c0_i32, %c0_i32_0 : i32, i32
  }
  func.func @transform_5(%arg0: i32) -> (i32, i32) {
    %c0_i32 = arith.constant 0 : i32
    %c0_i32_0 = arith.constant 0 : i32
    %c0_i32_1 = arith.constant 0 : i32
    return %c0_i32, %c0_i32_0 : i32, i32
  }
  func.func @transform_6(%arg0: i32) -> (i32, i32) {
    %c0_i32 = arith.constant 0 : i32
    %c0_i32_0 = arith.constant 0 : i32
    %c0_i32_1 = arith.constant 0 : i32
    return %c0_i32, %c0_i32_0 : i32, i32
  }
  func.func @transform_7(%arg0: i32) -> (i32, i32) {
    %c0_i32 = arith.constant 0 : i32
    %c0_i32_0 = arith.constant 0 : i32
    return %arg0, %c0_i32 : i32, i32
  }
}

</mosaic_0001>

<bundles_post_ra>
// kernel: tpu_custom_call.1
= control target key start
LH: loop header
LB: loop body
LE: loop exit
PB: predicated region body
PF: predicated region fallthrough
CT: control target
= control target key end

     0   :  { %s343_s0 = inlined_call_operand.vmem [shape: f32[8,32], index: 0, kind: input, shape index: {}]   ;;  %s344_s1 = inlined_call_operand.vmem [shape: bf16[32,64], index: 1, kind: input, shape index: {}]   ;;  %s345_s2 = inlined_call_operand.vmem [shape: f32[1,64], index: 2, kind: input, shape index: {}]   ;;  %s346_s3 = inlined_call_operand.vmem [shape: bf16[64,32], index: 3, kind: input, shape index: {}]   ;;  %s347_s4 = inlined_call_operand.vmem [shape: f32[1,32], index: 4, kind: input, shape index: {}]   ;;  %s348_s5 = inlined_call_operand.vmem [shape: bf16[32,16], index: 5, kind: input, shape index: {}]   ;;  %s349_s6 = inlined_call_operand.vmem [shape: f32[1,16], index: 6, kind: input, shape index: {}]   ;;  %s350_s7 = inlined_call_operand.hbm [shape: bf16[8,16], index: 7, kind: output, shape index: {}]  }
   0x1   :  { %v220_v0 = vld [vmem:[%s344_s1 + $0x8] sm:$0xff]  ;;  %v219_v1 = vld [vmem:[%s344_s1] sm:$0xff]  ;;  %v224_v2 = vld [vmem:[%s346_s3 + $0x18] sm:$0xff] }
   0x2   :  { %60 = vmatpush.bf16.msra.mxu0 %v220_v0  ;;  %v28_v3 = vld [vmem:[%s343_s0] sm:$0xff]  ;;  %113 = vmatpush.bf16.msra.mxu1 %v224_v2  ;;  %v223_v4 = vld [vmem:[%s346_s3 + $0x10] sm:$0xff] }
   0x3   :  { %12 = vsyncpa [#allocation3], 0  ;;  %v29_v5 = vpack.c.bf16 %v28_v3, %v28_v3  ;;  %vm50_vm0 = vcmask 261120   ;;  %v222_v6 = vld [vmem:[%s346_s3 + $0x8] sm:$0xff]  ;;  %v221_v7 = vld [vmem:[%s346_s3] sm:$0xff]  ;;  %vm105_vm1 = vcmask 523264  }
   0x4   :  { %v228_v8 = vld [vmem:[%s345_s2] ss:$0 sm:$0xff]  ;;  %v226_v14 = vld [vmem:[%s348_s5 + $0x8] sm:$0xff]  ;;  %s175_s23 = sshll.u32 %s350_s7, 4  ;;  %vm166_vm2 = vcmask 125952   ;;  %s176_s23 = int_to_ptr.hbm [resolvable:$true] %s175_s23 }
   0x5   :  { %153 = vmatpush.bf16.msra.mxu2 %v226_v14  ;;  %v225_v15 = vld [vmem:[%s348_s5] sm:$0xff] }
   0x6   :  { %61 = vmatpush.bf16.msra.mxu0 %v219_v1  ;;  %114 = vmatpush.bf16.msra.mxu1 %v223_v4  ;;  %v229_v16 = vld [vmem:[%s347_s4] ss:$0 sm:$0xff]  ;;  %s261_s4 = smov [#allocation2]  }
   0x7   :  { %v230_v22 = vld [vmem:[%s349_s6] ss:$0 sm:$0xff]  ;;  %s173_s5 = sshll.u32 %s261_s4, 4  ;;  %s174_s5 = int_to_ptr.vmem [resolvable:$true] %s173_s5 }
   0x9   :  { %192 = vmatmul.msk.bf16.vlgmr.msra.gmra.mxu0 %vm50_vm0, %v29_v5  ;;  %154 = vmatpush.bf16.msra.mxu2 %v225_v15 }
   0xa   :  { %115 = vmatpush.bf16.msra.mxu1 %v222_v6 }
   0xe   :  { %116 = vmatpush.bf16.msra.mxu1 %v221_v7 }
  0x86   :  { %v63_v9 = vpop.f32.mrf.mxu0 }
  0x87   :  { %v64_v10 = vadd.f32 %v228_v8, %v63_v9 }
  0x89   :  { %v67_v11 = vmax.f32 %v64_v10, 0.0 }
  0x8b   :  { %v68_v12 = vpack.c.bf16 %v67_v11, %v67_v11 }
  0x8d   :  { %209 = vmatmul.msk.bf16.vlgmr.msra.gmra.mxu1 %vm105_vm1, %v68_v12 }
  0x8e   :  { %v65_v13 = vpop.f32.mrf.mxu0 }
 0x10a   :  { %v118_v17 = vpop.f32.mrf.mxu1 }
 0x10b   :  { %v119_v18 = vadd.f32 %v229_v16, %v118_v17 }
 0x10d   :  { %v122_v19 = vmax.f32 %v119_v18, 0.0 }
 0x10f   :  { %v123_v20 = vpack.c.bf16 %v122_v19, %v122_v19 }
 0x111   :  { %218 = vmatmul.msk.bf16.vlgmr.msra.gmra.mxu2 %vm50_vm0, %v123_v20 }
 0x112   :  { %v120_v21 = vpop.f32.mrf.mxu1 }
 0x194   :  { %v156_v23 = vpop.f32.mrf.mxu2 }
 0x195   :  { %v157_v24 = vadd.f32 %v230_v22, %v156_v23 }
 0x197   :  { %v160_v25 = vsub.f32 0.0, %v157_v24 }
 0x199   :  { %v161_v26 = vmul.f32 1.442695, %v160_v25 }
 0x19b   :  { %231 = vpow2.f32 %v161_v26 }
 0x19c   :  { %v158_v27 = vpop.f32.mrf.mxu2 }
 0x1a1   :  { %v232_v28 = vpop.eup %231 }
 0x1a2   :  { %v163_v29 = vadd.f32 1.0, %v232_v28 }
 0x1a4   :  { %233 = vrcp.f32 %v163_v29 }
 0x1aa   :  { %v234_v30 = vpop.eup %233 }
 0x1ab   :  { %v165_v31 = vpack.c.bf16 %v234_v30, %v234_v30 }
 0x1ad   :  { %167 = vst.msk [vmem:[#allocation2] sm:$0xf] %vm166_vm2, %v165_v31 }
 0x1ae   :  { %178 = dma.vmem_to_hbm [thread:$0]  %s174_s5, 64, %s176_s23, [#allocation3]  }
 0x1af   :  { %259 = dma.done.wait [#allocation3], 64  }
 0x1b0   :  { %260 = vsyncadd [#allocation3], 4294967232 }
 0x1b1   :  { %183 = vsyncpa [#allocation3], 1 }

</bundles_post_ra>
